<compile_context>
chip_gen: v6e
topology: v6e:2x2x1
jax: 0.10.0
libtpu: 0.0.40
codegen_flags: <defaults>
</compile_context>

<pallas_src>
import functools
from collections import OrderedDict

import jax
import jax.numpy as jnp
from jax.experimental import pallas as pl
from jax.experimental.pallas import tpu as pltpu


def _min_euclid_kernel(x_ref, shp_ref, o_ref, *, S, L):
    # x_ref:   (1, C, L + S - 1)  padded input rows for this batch element
    # shp_ref: (C, K, S)          all shapelets of this block (VMEM resident)
    # o_ref:   (1, C, K, L)       negative euclidean distances, L lane-dense
    x = x_ref[0]                                     # (C, Lp) f32
    shp = shp_ref[...]                               # (C, K, S) f32
    C, K, _ = shp.shape

    acc = jnp.zeros((C, K, L), dtype=jnp.float32)
    # Static unroll over the (small) shapelet length: never materializes an
    # (L, K, S) tensor; K sits on sublanes, L on lanes.
    for s in range(S):
        win_s = x[:, s:s + L]                        # (C, L)  window offset s
        shp_s = shp[:, :, s]                         # (C, K)  shapelet element s
        diff = win_s[:, None, :] - shp_s[:, :, None]  # (C, K, L)
        acc = acc + diff * diff

    # Exact (non-mm) euclidean distance -> acc >= 0, no clamp needed.
    o_ref[0] = -jnp.sqrt(acc)


def min_euclidean_dist_block(x, shapelets):
    """x: (N, C, L) f32; shapelets: (C, K, S) f32 -> (N, C, K, L) f32 (negated dists)."""
    N, C, L = x.shape
    C2, K, S = shapelets.shape
    assert C == C2, "in_channels mismatch"

    # Same padding as F.pad(x, (pad, pad + (S-1) % 2)) in the PyTorch module.
    pad_left = (S - 1) // 2
    pad_right = pad_left + (S - 1) % 2
    x_pad = jnp.pad(x, ((0, 0), (0, 0), (pad_left, pad_right))).astype(jnp.float32)
    Lp = L + S - 1
    shapelets = shapelets.astype(jnp.float32)

    kernel = functools.partial(_min_euclid_kernel, S=S, L=L)
    out = pl.pallas_call(
        kernel,
        out_shape=jax.ShapeDtypeStruct((N, C, K, L), jnp.float32),
        grid_spec=pltpu.PrefetchScalarGridSpec(
            num_scalar_prefetch=0,
            grid=(N,),
            in_specs=[
                # One batch element (all channels) per grid step.
                pl.BlockSpec((1, C, Lp), lambda n: (n, 0, 0)),
                # Full shapelet bank, constant index -> DMA'd once, stays in VMEM.
                pl.BlockSpec((C, K, S), lambda n: (0, 0, 0)),
            ],
            out_specs=pl.BlockSpec((1, C, K, L), lambda n: (n, 0, 0, 0)),
        ),
        compiler_params=pltpu.CompilerParams(
            dimension_semantics=("parallel",)),
    )(x_pad, shapelets)
    return out


def shapelets_dist_blocks(x, shapelets_list):
    """ShapeletsDistBlocks.forward with dist_measure='euclidean'.

    x: (N, C, L); shapelets_list: list of (C, K_i, S_i) -> (N, C, L, sum_i K_i).
    """
    outs = [min_euclidean_dist_block(x, shp) for shp in shapelets_list]
    out_kl = jnp.concatenate(outs, axis=2)           # (N, C, sumK, L), lane-dense kernel layout
    return jnp.swapaxes(out_kl, 2, 3)                # (N, C, L, sumK), PyTorch layout


def _reference(x, shapelets_list):
    """Pure-JAX reference mirroring the PyTorch forward."""
    N, C, L = x.shape
    outs = []
    for shp in shapelets_list:
        _, K, S = shp.shape
        pad_left = (S - 1) // 2
        pad_right = pad_left + (S - 1) % 2
        x_pad = jnp.pad(x, ((0, 0), (0, 0), (pad_left, pad_right)))
        idx = jnp.arange(L)[:, None] + jnp.arange(S)[None, :]
        windows = x_pad[:, :, idx]                                  # (N, C, L, S)
        diff = windows[:, :, :, None, :] - shp[None, :, None, :, :]
        outs.append(-jnp.sqrt(jnp.sum(diff * diff, axis=-1)))       # (N, C, L, K)
    return jnp.concatenate(outs, axis=-1)


if __name__ == "__main__":
    # ShapeletsDistBlocks hyperparameters (deterministic, in-script).
    batch = 2
    in_channels = 4       # C
    seq_len = 16          # L
    # shapelets_size -> num_shapelets (sorted by size, as in the module)
    shapelets_size_and_len = OrderedDict(sorted({3: 4, 5: 8}.items(), key=lambda kv: kv[0]))

    key = jax.random.PRNGKey(0)
    keys = jax.random.split(key, 1 + len(shapelets_size_and_len))
    kx, kws = keys[0], keys[1:]
    x = jax.random.normal(kx, (batch, in_channels, seq_len), dtype=jnp.float32)
    # One nn.Parameter(torch.randn(C, K_i, S_i)) per MinEuclideanDistBlock.
    shapelets_list = [
        jax.random.normal(kw, (in_channels, k, s), dtype=jnp.float32)
        for kw, (s, k) in zip(kws, shapelets_size_and_len.items())
    ]

    out = shapelets_dist_blocks(x, shapelets_list)
    out = jax.block_until_ready(out)

    ref = _reference(x, shapelets_list)
    total_k = sum(shapelets_size_and_len.values())
    assert out.shape == (batch, in_channels, seq_len, total_k)
    assert jnp.allclose(out, ref, atol=1e-5, rtol=1e-5), "mismatch vs reference"

    print("KERNEL_OK")
</pallas_src>

<mosaic_0001>
module attributes {stable_mosaic.version = 11 : i64} {
  func.func @_min_euclid_kernel(%arg0: i32, %arg1: memref<1x4x18xf32, #tpu.memory_space<vmem>>, %arg2: memref<4x4x3xf32, #tpu.memory_space<vmem>>, %arg3: memref<1x4x4x16xf32, #tpu.memory_space<vmem>>) attributes {dimension_semantics = [#tpu.dimension_semantics<parallel>], iteration_bounds = array<i64: 2>, scalar_prefetch = 0 : i64, scratch_operands = 0 : i64, tpu.core_type = #tpu.core_type<tc>, window_params = [{transform_indices = @transform_0, window_bounds = array<i64: 1, 4, 18>}, {pipeline_mode = #tpu.pipeline_mode<synchronous>, transform_indices = @transform_1, window_bounds = array<i64: 4, 4, 3>}, {transform_indices = @transform_2, window_bounds = array<i64: 1, 4, 4, 16>}]} {
    %c0 = arith.constant 0 : index
    %c0_0 = arith.constant 0 : index
    %c0_1 = arith.constant 0 : index
    %0 = vector.load %arg1[%c0, %c0_0, %c0_1] : memref<1x4x18xf32, #tpu.memory_space<vmem>>, vector<1x4x18xf32>
    %1 = vector.shape_cast %0 : vector<1x4x18xf32> to vector<4x18xf32>
    %c0_2 = arith.constant 0 : index
    %c0_3 = arith.constant 0 : index
    %c0_4 = arith.constant 0 : index
    %2 = vector.load %arg2[%c0_2, %c0_3, %c0_4] : memref<4x4x3xf32, #tpu.memory_space<vmem>>, vector<4x4x3xf32>
    %cst = arith.constant 0.000000e+00 : f32
    %3 = vector.broadcast %cst : f32 to vector<4x4x16xf32>
    %4 = vector.extract_strided_slice %1 {offsets = [0, 0], sizes = [4, 16], strides = [1, 1]} : vector<4x18xf32> to vector<4x16xf32>
    %5 = vector.extract_strided_slice %2 {offsets = [0, 0, 0], sizes = [4, 4, 1], strides = [1, 1, 1]} : vector<4x4x3xf32> to vector<4x4x1xf32>
    %6 = vector.shape_cast %5 : vector<4x4x1xf32> to vector<4x4xf32>
    %7 = vector.shape_cast %4 : vector<4x16xf32> to vector<4x1x16xf32>
    %8 = vector.shape_cast %6 : vector<4x4xf32> to vector<4x4x1xf32>
    %9 = vector.broadcast %7 : vector<4x1x16xf32> to vector<4x4x16xf32>
    %10 = vector.broadcast %8 : vector<4x4x1xf32> to vector<4x4x16xf32>
    %11 = arith.subf %9, %10 : vector<4x4x16xf32>
    %12 = arith.mulf %11, %11 : vector<4x4x16xf32>
    %13 = arith.addf %3, %12 : vector<4x4x16xf32>
    %14 = vector.extract_strided_slice %1 {offsets = [0, 1], sizes = [4, 16], strides = [1, 1]} : vector<4x18xf32> to vector<4x16xf32>
    %15 = vector.extract_strided_slice %2 {offsets = [0, 0, 1], sizes = [4, 4, 1], strides = [1, 1, 1]} : vector<4x4x3xf32> to vector<4x4x1xf32>
    %16 = vector.shape_cast %15 : vector<4x4x1xf32> to vector<4x4xf32>
    %17 = vector.shape_cast %14 : vector<4x16xf32> to vector<4x1x16xf32>
    %18 = vector.shape_cast %16 : vector<4x4xf32> to vector<4x4x1xf32>
    %19 = vector.broadcast %17 : vector<4x1x16xf32> to vector<4x4x16xf32>
    %20 = vector.broadcast %18 : vector<4x4x1xf32> to vector<4x4x16xf32>
    %21 = arith.subf %19, %20 : vector<4x4x16xf32>
    %22 = arith.mulf %21, %21 : vector<4x4x16xf32>
    %23 = arith.addf %13, %22 : vector<4x4x16xf32>
    %24 = vector.extract_strided_slice %1 {offsets = [0, 2], sizes = [4, 16], strides = [1, 1]} : vector<4x18xf32> to vector<4x16xf32>
    %25 = vector.extract_strided_slice %2 {offsets = [0, 0, 2], sizes = [4, 4, 1], strides = [1, 1, 1]} : vector<4x4x3xf32> to vector<4x4x1xf32>
    %26 = vector.shape_cast %25 : vector<4x4x1xf32> to vector<4x4xf32>
    %27 = vector.shape_cast %24 : vector<4x16xf32> to vector<4x1x16xf32>
    %28 = vector.shape_cast %26 : vector<4x4xf32> to vector<4x4x1xf32>
    %29 = vector.broadcast %27 : vector<4x1x16xf32> to vector<4x4x16xf32>
    %30 = vector.broadcast %28 : vector<4x4x1xf32> to vector<4x4x16xf32>
    %31 = arith.subf %29, %30 : vector<4x4x16xf32>
    %32 = arith.mulf %31, %31 : vector<4x4x16xf32>
    %33 = arith.addf %23, %32 : vector<4x4x16xf32>
    %34 = math.sqrt %33 : vector<4x4x16xf32>
    %cst_5 = arith.constant 0.000000e+00 : f32
    %35 = vector.broadcast %cst_5 : f32 to vector<4x4x16xf32>
    %36 = arith.subf %35, %34 : vector<4x4x16xf32>
    %c0_6 = arith.constant 0 : index
    %c0_7 = arith.constant 0 : index
    %c0_8 = arith.constant 0 : index
    %c0_9 = arith.constant 0 : index
    %37 = vector.load %arg3[%c0_6, %c0_7, %c0_8, %c0_9] : memref<1x4x4x16xf32, #tpu.memory_space<vmem>>, vector<1x4x4x16xf32>
    %38 = vector.shape_cast %37 : vector<1x4x4x16xf32> to vector<4x4x16xf32>
    %39 = vector.shape_cast %36 : vector<4x4x16xf32> to vector<1x4x4x16xf32>
    tpu.vector_store %arg3[%c0_6, %c0_7, %c0_8, %c0_9], %39 {strides = array<i32>} : memref<1x4x4x16xf32, #tpu.memory_space<vmem>>, vector<1x4x4x16xf32>,
    return
  }
  func.func @transform_0(%arg0: i32) -> (i32, i32, i32) {
    %c0_i32 = arith.constant 0 : i32
    %c0_i32_0 = arith.constant 0 : i32
    %c0_i32_1 = arith.constant 0 : i32
    return %arg0, %c0_i32, %c0_i32_0 : i32, i32, i32
  }
  func.func @transform_1(%arg0: i32) -> (i32, i32, i32) {
    %c0_i32 = arith.constant 0 : i32
    %c0_i32_0 = arith.constant 0 : i32
    %c0_i32_1 = arith.constant 0 : i32
    %c0_i32_2 = arith.constant 0 : i32
    return %c0_i32, %c0_i32_0, %c0_i32_1 : i32, i32, i32
  }
  func.func @transform_2(%arg0: i32) -> (i32, i32, i32, i32) {
    %c0_i32 = arith.constant 0 : i32
    %c0_i32_0 = arith.constant 0 : i32
    %c0_i32_1 = arith.constant 0 : i32
    %c0_i32_2 = arith.constant 0 : i32
    return %arg0, %c0_i32, %c0_i32_0, %c0_i32_1 : i32, i32, i32, i32
  }
}

</mosaic_0001>

<bundles_post_ra>
// kernel: tpu_custom_call.1
= control target key start
LH: loop header
LB: loop body
LE: loop exit
PB: predicated region body
PF: predicated region fallthrough
CT: control target
= control target key end

     0   :  { %7 = vsyncpa [#allocation3], 0  ;;  %s705_s0 = inlined_call_operand.vmem [shape: f32[2,4,18], index: 0, kind: input, shape index: {}]   ;;  %s706_s1 = inlined_call_operand.vmem [shape: f32[4,4,3], index: 1, kind: input, shape index: {}]   ;;  %s707_s2 = inlined_call_operand.hbm [shape: f32[2,4,4,16], index: 2, kind: output, shape index: {}]  }
   0x1   :  { %9 = vsyncpa [#allocation3 + $0x1], 0  ;;  %s583_s9 = smov 0   ;;  %s585_s10 = smov 0  }
   0x2   :  { %s587_s11 = smov 0   ;;  %s589_s12 = smov 0  }
   0x3 LB: > { %s604_s13 = sadd.s32 4294967295, %s557_s12   ;;  %s422_s14 = sadd.s32 4294967294, %s557_s12   ;;  %s557_s12 = sphi %s589_s12, %s713_s12   ;;  %s553_s11 = sphi %s587_s11, %s712_s11   ;;  %s549_s10 = sphi %s585_s10, %s711_s10   ;;  %s545_s9 = sphi %s583_s9, %s710_s9  }
   0x4   : > { %s608_s15 = sadd.s32 1, %s557_s12   ;;  %s69_s16 = sadd.s32 1, %s553_s11 }
   0x5   : > { %s66_s17 = ssub.s32 %s557_s12, %s608_s15  ;;  %p79_p0 = scmp.ne.s32.totalorder %s553_s11, %s549_s10 }
   0x6   : > { %p67_p1 = scmp.eq.s32.totalorder %s66_s17, 0  ;;  %p80_p2 = scmp.eq.s32.totalorder %s604_s13, 1 }
   0x7   : > { %p85_p3 = scmp.ne.s32.totalorder %s549_s10, %s545_s9  ;;  %p86_p4 = scmp.eq.s32.totalorder %s422_s14, 1 }
   0x8   : > { %s619_s18 = scalar_select %p67_p1, %s553_s11, %s69_s16  }
   0x9   : > { %p621_p5 = por %p80_p2, %p79_p0  ;;  %p625_p6 = por %p86_p4, %p85_p3 }
   0xa   : > { %p425_p7 = scmp.ge.s32.totalorder %s557_s12, 1  ;;  %p114_p8 = scmp.lt.s32.totalorder %s557_s12, 3 }
   0xc   : > { %p115_p9 = pnand %p425_p7, %p114_p8 }
   0xd   : > { %p135_p10 = scmp.lt.s32.totalorder (!%p115_p9), %s604_s13, 1  ;;  %s563_s6 = smov (!%p115_p9), 127  }
   0xe   : > { %118 = sbr.rel (%p115_p9) target bundleno = 316 (0x13c), region = 28  ;;  %s564_s7 = smov (!%p115_p9), 126  }
   0xf   : > { %s132_s8 = sand.u32 (!%p115_p9), 1, %s549_s10   ;;  %s434_s17 = sshll.u32 (!%p115_p9), %s604_s13, 8 }
  0x10   : > { %s426_s14 = sshll.u32 (!%p115_p9), %s132_s8, 4  ;;  %s658_s24 = scalar_lea.hbm (!%p115_p9), %s707_s2, %s434_s17 }
  0x11   : > { %s134_s16 = scalar_lea.vmem (!%p115_p9), [#allocation2], %s426_s14  ;;  %s565_s26 = smov (!%p115_p9), [#allocation2]  }
  0x12   : > { %s360_s21 = sshll.u32 (!%p115_p9), %s134_s16, 4  ;;  %s501_s27 = sshll.u32 (!%p115_p9), %s565_s26, 4  ;;  %s660_s21 = int_to_ptr.vmem [resolvable:$true] %s360_s21  ;;  %s502_s27 = int_to_ptr.vmem [resolvable:$false] %s501_s27 }
  0x13   : > { %v142_v0 = vld [vmem:[%s706_s1 + $0x8] sm:$0xf]  ;;  %v140_v1 = vld [vmem:[%s706_s1] sm:$0xf]  ;;  %v559_v2 = vmov 1   ;;  %v560_v5 = vmov 2   ;;  %v156_v9 = vlaneseq  ;;  %p504_p0 = scmp.lt.s32.totalorder %s660_s21, %s502_s27 }
  0x14   : > { %483 = vset.pattern.permute.xlu1 %v559_v2  ;;  %482 = vset.pattern.permute.xlu0 %v559_v2  ;;  %v143_v3 = vld [vmem:[%s706_s1 + $0xc] sm:$0xf]  ;;  %v141_v4 = vld [vmem:[%s706_s1 + $0x4] sm:$0xf]  ;;  %v561_v6 = vmov 0   ;;  %s136_s29 = scalar_select %p135_p10, %s604_s13, 1 }
  0x15   : > { %230 = vperm.xlu1 %483, %v142_v0   ;;  %222 = vperm.xlu0 %482, %v140_v1   ;;  %v562_v7 = vmov 1966171168   ;;  %v157_v11 = vshrl.u32 %v156_v9, 7  ;;  %vm341_vm2 = vcmask 125952   ;;  %s665_s13 = scalar_lea.sflag [#allocation3], %s132_s8  ;;  %s497_s25 = scalar_lea.vmem %s660_s21, 256 }
  0x16   : > { %v154_v8 = vunpack.c.l.s4 %v562_v7  ;;  %s427_s30 = sshll.u32 %s136_s29, 2  ;;  %p498_p11 = scmp.ne.s32.totalorder %s660_s21, %s497_s25 }
  0x17   : > { %s138_s5 = scalar_lea.vmem %s705_s0, %s427_s30  ;;  %v171_v16 = vsub.s32 0, %v157_v11  ;;  %s503_s28 = scalar_lea.vmem %s502_s27, 512 }
  0x18   : > { %v155_v10 = vunpack.c.0.s8 %v154_v8  ;;  %v428_v13 = vld.sshfl [vmem:[%s138_s5] sm:$0x33 pattern:$0x75316420]  ;;  %p499_p12 = pnand %p498_p11, %p621_p5  ;;  %p505_p1 = scmp.lt.s32.totalorder %s503_s28, %s497_s25 }
  0x19   : > { %234 = vperm.xlu1 %483, %v143_v3   ;;  %226 = vperm.xlu0 %482, %v141_v4   ;;  %v152_v15 = vcombine.high %v428_v13, %v428_v13 }
  0x1a   : > { %v158_v12 = vsub.s32 %v155_v10, %v157_v11  ;;  %p500_p13 = pneg %p499_p12  ;;  %p506_p2 = por %p505_p1, %p504_p0 }
  0x1c   : > { %v159_v14 = vrot.slane %v428_v13, %v158_v12  ;;  %v166_v18 = vrot.slane %v152_v15, %v158_v12  ;;  %p507_p3 = pnand %p506_p2, %p500_p13 }
  0x1d   : > { %485 = vset.pattern.permute.xlu1 %v560_v5  ;;  %484 = vset.pattern.permute.xlu0 %v560_v5 }
  0x1e   : > { %270 = vperm.xlu1 %485, %v141_v4   ;;  %266 = vperm.xlu0 %484, %v140_v1   ;;  %v167_v17 = vcombine.high %v159_v14, %v159_v14  ;;  %v172_v20 = vrot.slane %v159_v14, %v171_v16  ;;  %v168_v21 = vcombine.high %v166_v18, %v166_v18 }
  0x1f   : > { %v176_v26 = vrot.slane %v166_v18, %v171_v16 }
  0x20   : > { %v180_v19 = vrot.slane %v167_v17, %v171_v16  ;;  %v184_v28 = vrot.slane %v168_v21, %v171_v16 }
  0x22   : > { %274 = vperm.xlu1 %485, %v142_v0   ;;  %278 = vperm.xlu0 %484, %v143_v3  }
  0x26   : > { %486 = vset.pattern.permute.xlu1 %v561_v6  ;;  %487 = vset.pattern.permute.xlu0 %v561_v6 }
  0x27   : > { %191 = vperm.xlu1 %486, %v140_v1   ;;  %196 = vperm.xlu0 %487, %v141_v4  }
  0x2b   : > { %201 = vperm.xlu1 %486, %v142_v0   ;;  %488 = vset.pattern.permute.xlu0 %v560_v5 }
  0x2f   : > { %206 = vperm.xlu1 %486, %v143_v3  }
  0x90   : > { %v231_v22 = vpop.permute.xlu1 %230  ;;  %v223_v23 = vpop.permute.xlu0 %222 }
  0x91   : > { %v239_v24 = vsub.f32 %v180_v19, %v231_v22  ;;  %v237_v25 = vsub.f32 %v172_v20, %v223_v23 }
  0x93   : > { %v241_v27 = vmul.f32 %v237_v25, %v237_v25  ;;  %v243_v31 = vmul.f32 %v239_v24, %v239_v24 }
  0x94   : > { %v235_v29 = vpop.permute.xlu1 %234  ;;  %v227_v30 = vpop.permute.xlu0 %226 }
  0x95   : > { %v238_v32 = vsub.f32 %v176_v26, %v227_v30  ;;  %249 = vrot.lane.b32.xlu0 %v241_v27, %s563_s6  ;;  %v240_v33 = vsub.f32 %v184_v28, %v235_v29 }
  0x97   : > { %v242_v34 = vmul.f32 %v238_v32, %v238_v32  ;;  %v244_v39 = vmul.f32 %v240_v33, %v240_v33 }
  0x99   : > { %v271_v35 = vpop.permute.xlu1 %270  ;;  %v267_v36 = vpop.permute.xlu0 %266  ;;  %253 = vrot.lane.b32.xlu0 %v243_v31, %s563_s6  ;;  %251 = vrot.lane.b32.xlu1 %v242_v34, %s563_s6 }
  0x9a   : > { %v282_v37 = vsub.f32 %v176_v26, %v271_v35  ;;  %v281_v38 = vsub.f32 %v172_v20, %v267_v36 }
  0x9c   : > { %v285_v40 = vmul.f32 %v281_v38, %v281_v38  ;;  %v286_v41 = vmul.f32 %v282_v37, %v282_v37 }
  0x9d   : > { %v275_v42 = vpop.permute.xlu1 %274  ;;  %v279_v43 = vpop.permute.xlu0 %278  ;;  %255 = vrot.lane.b32.xlu1 %v244_v39, %s563_s6 }
  0x9e   : > { %v283_v44 = vsub.f32 %v180_v19, %v275_v42  ;;  %293 = vrot.lane.b32.xlu0 %v285_v40, %s564_s7  ;;  %v284_v45 = vsub.f32 %v184_v28, %v279_v43 }
  0xa0   : > { %v287_v46 = vmul.f32 %v283_v44, %v283_v44  ;;  %v288_v47 = vmul.f32 %v284_v45, %v284_v45 }
  0xa1   : > { %295 = vrot.lane.b32.xlu1 %v286_v41, %s564_s7 }
  0xa2   : > { %297 = vrot.lane.b32.xlu0 %v287_v46, %s564_s7  ;;  %v192_v48 = vpop.permute.xlu1 %191  ;;  %v197_v50 = vpop.permute.xlu0 %196 }
  0xa3   : > { %v209_v53 = vsub.f32 %v172_v20, %v192_v48  ;;  %v210_v54 = vsub.f32 %v176_v26, %v197_v50 }
  0xa5   : > { %299 = vrot.lane.b32.xlu1 %v288_v47, %s564_s7  ;;  %v213_v57 = vmul.f32 %v209_v53, %v209_v53  ;;  %v214_v59 = vmul.f32 %v210_v54, %v210_v54 }
  0xa6   : > { %v202_v49 = vpop.permute.xlu1 %201 }
  0xa7   : > { %v211_v58 = vsub.f32 %v180_v19, %v202_v49 }
  0xa9   : > { %v215_v0 = vmul.f32 %v211_v58, %v211_v58 }
  0xaa   : > { %v207_v51 = vpop.permute.xlu1 %206 }
  0xab   : > { %v212_v62 = vsub.f32 %v184_v28, %v207_v51 }
  0xad   : > { %v216_v5 = vmul.f32 %v212_v62, %v212_v62 }
 0x107   : > { %v250_v52 = vpop.permute.xlu0 %249 }
 0x108   : > { %v261_v60 = vadd.f32 %v250_v52, %v213_v57 }
 0x10b   : > { %v254_v55 = vpop.permute.xlu0 %253  ;;  %v252_v56 = vpop.permute.xlu1 %251 }
 0x10c   : > { %v262_v2 = vadd.f32 %v252_v56, %v214_v59  ;;  %v263_v3 = vadd.f32 %v254_v55, %v215_v0 }
 0x10f   : > { %v256_v61 = vpop.permute.xlu1 %255 }
 0x110   : > { %v294_v63 = vpop.permute.xlu0 %293  ;;  %v264_v9 = vadd.f32 %v256_v61, %v216_v5 }
 0x111   : > { %v305_v1 = vadd.f32 %v294_v63, %v261_v60 }
 0x113   : > { %489 = vrsqrt.f32 %v305_v1  ;;  %v296_v4 = vpop.permute.xlu1 %295  ;;  %vm311_vm0 = vcmp.eq.f32.partialorder %v305_v1, inf  ;;  %v314_v14 = vand.u32 2147483648, %v305_v1  ;;  %vm313_vm1 = vcmp.eq.f32.partialorder %v305_v1, 0.0 }
 0x114   : > { %v306_v6 = vadd.f32 %v296_v4, %v262_v2  ;;  %v298_v7 = vpop.permute.xlu0 %297 }
 0x115   : > { %v307_v8 = vadd.f32 %v298_v7, %v263_v3 }
 0x116   : > { %491 = vrsqrt.f32 %v306_v6  ;;  %vm318_vm3 = vcmp.eq.f32.partialorder %v306_v6, inf  ;;  %v321_v21 = vand.u32 2147483648, %v306_v6  ;;  %vm320_vm4 = vcmp.eq.f32.partialorder %v306_v6, 0.0 }
 0x117   : > { %493 = vrsqrt.f32 %v307_v8  ;;  %v300_v10 = vpop.permute.xlu1 %299  ;;  %vm325_vm5 = vcmp.eq.f32.partialorder %v307_v8, inf  ;;  %v328_v24 = vand.u32 2147483648, %v307_v8  ;;  %vm327_vm6 = vcmp.eq.f32.partialorder %v307_v8, 0.0 }
 0x118   : > { %v308_v11 = vadd.f32 %v300_v10, %v264_v9 }
 0x11a   : > { %495 = vrsqrt.f32 %v308_v11  ;;  %vm332_vm7 = vcmp.eq.f32.partialorder %v308_v11, inf  ;;  %v335_v32 = vand.u32 2147483648, %v308_v11  ;;  %vm334_vm8 = vcmp.eq.f32.partialorder %v308_v11, 0.0 }
 0x120   : > { %v490_v12 = vpop.eup %489 }
 0x121   : > { %v310_v13 = vmul.f32 %v490_v12, %v305_v1 }
 0x123   : > { %v492_v15 = vpop.eup %491  ;;  %v312_v16 = vsel %vm311_vm0, %v305_v1, %v310_v13 }
 0x124   : > { %v494_v17 = vpop.eup %493  ;;  %v315_v18 = vsel %vm313_vm1, %v314_v14, %v312_v16  ;;  %v317_v19 = vmul.f32 %v492_v15, %v306_v6 }
 0x125   : > { %v337_v20 = vsub.f32 0.0, %v315_v18  ;;  %v324_v22 = vmul.f32 %v494_v17, %v307_v8 }
 0x126   : > { %v319_v23 = vsel %vm318_vm3, %v306_v6, %v317_v19 }
 0x127   : > { %v496_v25 = vpop.eup %495  ;;  %v322_v26 = vsel %vm320_vm4, %v321_v21, %v319_v23  ;;  %v326_v27 = vsel %vm325_vm5, %v307_v8, %v324_v22  ;;  %342 = vst.msk [vmem:[%s134_s16] sm:$0xf] %vm341_vm2, %v337_v20 }
 0x128   : > { %v338_v28 = vsub.f32 0.0, %v322_v26  ;;  %v329_v29 = vsel %vm327_vm6, %v328_v24, %v326_v27  ;;  %v331_v30 = vmul.f32 %v496_v25, %v308_v11 }
 0x129   : > { %v339_v31 = vsub.f32 0.0, %v329_v29 }
 0x12a   : > { %v333_v33 = vsel %vm332_vm7, %v308_v11, %v331_v30  ;;  %343 = vst.msk [vmem:[%s134_s16 + $0x4] sm:$0xf] %vm341_vm2, %v338_v28 }
 0x12b   : > { %v336_v34 = vsel %vm334_vm8, %v335_v32, %v333_v33  ;;  %344 = vst.msk [vmem:[%s134_s16 + $0x8] sm:$0xf] %vm341_vm2, %v339_v31 }
 0x12c   : > { %v340_v35 = vsub.f32 0.0, %v336_v34 }
 0x12e   : > { %345 = vst.msk [vmem:[%s134_s16 + $0xc] sm:$0xf] %vm341_vm2, %v340_v35 }
 0x12f   : > { %510 = shalt.err (!%p507_p3)
}
 0x130   : > { %s511_s29 = scalar_lea.hbm %s658_s24, 256  ;;  %s515_s4 = scalar_lea.hbm %s707_s2, 512 }
 0x131   : > { %p512_p4 = scmp.ne.s32.totalorder %s658_s24, %s511_s29  ;;  %p516_p9 = scmp.lt.s32.totalorder %s658_s24, %s707_s2 }
 0x132   : > { %p517_p10 = scmp.lt.s32.totalorder %s515_s4, %s511_s29 }
 0x133   : > { %p513_p7 = pnand %p512_p4, %p621_p5 }
 0x134   : > { %p518_p11 = por %p517_p10, %p516_p9 }
 0x135   : > { %p514_p8 = pneg %p513_p7 }
 0x137   : > { %p519_p12 = pnand %p518_p11, %p514_p8 }
 0x139   : > { %522 = shalt.err (!%p519_p12)
}
 0x13a   : > { %s566_s7 = smov 64   ;;  %s567_s8 = smov 4  }
 0x13b   : > { %435 = dma.vmem_to_hbm [thread:$0]  (%p621_p5), %s660_s21, 256, %s658_s24, %s665_s13, %s566_s7, %s566_s7, %s567_s8  }
 0x13c PF: > { %p441_p13 = scmp.ge.s32.totalorder %s557_s12, 2  ;;  %s375_s14 = sand.u32 1, %s545_s9  }
 0x13d   : > { %s376_s16 = scalar_lea.sflag [#allocation3], %s375_s14 }
 0x13e   : > { %p438_p0 = pnand %p441_p13, %p625_p6 }
 0x140   : > { %p439_p1 = pneg %p438_p0 }
 0x142   : > { %540 = dma.done.wait (%p439_p1), %s376_s16, 256  }
 0x143   : > { %542 = vsyncadd (%p439_p1), %s376_s16, 4294967040  ;;  %p12_p2 = scmp.ge.s32.totalorder %s608_s15, 4   ;;  %s710_s9 = smov %s549_s10 }
 0x144   : > { %s711_s10 = smov %s553_s11  ;;  %s712_s11 = smov %s619_s18 }
 0x145   : > { %s713_s12 = smov %s608_s15  ;;  %14 = sbr.rel (!%p12_p2) target bundleno = 3 (0x3), region = 63 }
 0x14a   :  { %381 = vsyncpa [#allocation3], 1 }
 0x14b   :  { %383 = vsyncpa [#allocation3 + $0x1], 1 }

</bundles_post_ra>
